<compile_context>
chip_gen: v7x
topology: tpu7x:2x2x1
jax: 0.10.0
libtpu: 0.0.40
codegen_flags: <defaults>
</compile_context>

<pallas_src>
import functools

import jax
import jax.numpy as jnp
from jax import lax
from jax.experimental import pallas as pl
from jax.experimental.pallas import tpu as pltpu


def _round_up(x, m):
    return ((x + m - 1) // m) * m


def _ce_loss_kernel(pred_ref, labels_ref, wy_ref, loss_ref, wsum_ref, *, batch_size):
    c = pl.program_id(0)           # core-split axis ("parallel")
    i = pl.program_id(1)           # batch-tile axis ("arbitrary", accumulates)
    n_steps = pl.num_programs(1)

    # Output blocks depend only on `c`, so they stay resident in VMEM across `i`:
    # use them directly as accumulators (init once per core-slice).
    @pl.when(i == 0)
    def _init():
        loss_ref[...] = jnp.zeros_like(loss_ref)
        wsum_ref[...] = jnp.zeros_like(wsum_ref)

    x = pred_ref[...].astype(jnp.float32)      # (TB, C) logits, upcast in-kernel
    labels = labels_ref[...]                   # (TB, 1) int32
    w_y = wy_ref[...]                          # (TB, 1) f32  = weight_CE[labels]

    TB, C = x.shape

    # Row validity: handles the partial final tile AND clamped duplicate blocks when
    # cdiv(B, TB) does not split evenly across the core axis.
    row = lax.broadcasted_iota(jnp.int32, (TB, 1), 0)
    global_row = (c * n_steps + i) * TB + row
    valid = global_row < batch_size            # (TB, 1) bool

    # Numerically stable log-sum-exp over classes (per-row; garbage in padded rows
    # cannot leak into valid rows and is discarded by the select below).
    m = jnp.max(x, axis=1, keepdims=True)                      # (TB, 1)
    s = jnp.sum(jnp.exp(x - m), axis=1, keepdims=True)         # (TB, 1)
    lse = m + jnp.log(s)                                       # (TB, 1)

    # Label-logit gather as select-and-reduce (no f32 one_hot temporary).
    col = lax.broadcasted_iota(jnp.int32, (TB, C), 1)
    x_y = jnp.sum(jnp.where(col == labels, x, 0.0), axis=1, keepdims=True)

    ce = w_y * (lse - x_y)                     # -w_y * log_softmax(x)[y], (TB, 1)

    # Select-based output masking (NaN/Inf in padded rows is simply dropped).
    loss_ref[0] = loss_ref[0] + jnp.where(valid, ce, 0.0)
    wsum_ref[0] = wsum_ref[0] + jnp.where(valid, w_y, 0.0)


def ce_loss(predicted, labels, weight_ce, *, tile_b=None):
    """predicted: (B, C) float, labels: (B,) int, weight_ce: (C,) float -> scalar f32."""
    B, C = predicted.shape
    itemsize = jnp.dtype(predicted.dtype).itemsize

    labels2d = labels.astype(jnp.int32).reshape(B, 1)
    # Class-weight gather done once in plain JAX (B*4 bytes extra HBM traffic,
    # removes a (TB,C) broadcast+multiply+lane-reduce from every kernel step).
    wy2d = weight_ce.astype(jnp.float32)[labels].reshape(B, 1)

    # --- VMEM-aware batch tile ------------------------------------------------
    if tile_b is None:
        t_live_f32 = 4                                    # live f32 (TB,C) temporaries
        budget = 20 << 20                                 # per-core budget, fits all gens
        per_row = C * (2 * itemsize + t_live_f32 * 4) + 64
        tile_b = max(8, (budget // per_row) // 8 * 8)
        tile_b = min(tile_b, 1024)
    tile_b = max(8, (min(tile_b, _round_up(B, 8)) // 8) * 8)

    # --- Grid: (core split, batch tiles per core) -----------------------------
    n_blocks = pl.cdiv(B, tile_b)
    num_splits = 2 if n_blocks >= 2 else 1      # uses both TCs on v7x; harmless elsewhere
    n_steps = pl.cdiv(n_blocks, num_splits)
    grid = (num_splits, n_steps)
    last_block = n_blocks - 1

    def batch_map(c, i):
        # Clamp so padded (core, step) pairs re-read an in-bounds block; their rows are
        # masked out inside the kernel via the unclamped global row index.
        return (jnp.minimum(c * n_steps + i, last_block), 0)

    # --- Compiler params ------------------------------------------------------
    est_vmem = 2 * tile_b * C * itemsize + 4 * tile_b * C * 4 + 8 * tile_b * 4
    params = {"dimension_semantics": ("parallel", "arbitrary")}
    if est_vmem > (12 << 20):   # v5e scoped-VMEM default is only 16 MiB
        params["vmem_limit_bytes"] = int(min(est_vmem + (8 << 20), 48 << 20))

    kernel = functools.partial(_ce_loss_kernel, batch_size=B)

    loss_parts, w_parts = pl.pallas_call(
        kernel,
        out_shape=(
            jax.ShapeDtypeStruct((num_splits, tile_b, 1), jnp.float32),
            jax.ShapeDtypeStruct((num_splits, tile_b, 1), jnp.float32),
        ),
        grid=grid,
        in_specs=[
            pl.BlockSpec((tile_b, C), batch_map),   # logits, native dtype
            pl.BlockSpec((tile_b, 1), batch_map),   # labels
            pl.BlockSpec((tile_b, 1), batch_map),   # w_y = weight_CE[labels]
        ],
        out_specs=(
            pl.BlockSpec((1, tile_b, 1), lambda c, i: (c, 0, 0)),
            pl.BlockSpec((1, tile_b, 1), lambda c, i: (c, 0, 0)),
        ),
        compiler_params=pltpu.CompilerParams(**params),
    )(predicted, labels2d, wy2d)

    # Final cross-row / cross-core reduction and 'mean' normalization in plain JAX.
    return jnp.sum(loss_parts) / jnp.sum(w_parts)


def _ce_loss_ref(predicted, labels, weight_ce):
    """Pure-JAX reference mirroring nn.CrossEntropyLoss(weight=weight_ce)."""
    logp = jax.nn.log_softmax(predicted.astype(jnp.float32), axis=1)
    logp_y = jnp.take_along_axis(logp, labels[:, None].astype(jnp.int32), axis=1)[:, 0]
    w_y = weight_ce.astype(jnp.float32)[labels]
    ce = -w_y * logp_y
    return jnp.sum(ce) / jnp.sum(w_y)


if __name__ == "__main__":
    key = jax.random.PRNGKey(0)
    k1, k2 = jax.random.split(key)

    # Small shapes consistent with the module (sequence-model classification loss).
    batch_size = 8
    num_classes = 4
    predicted = jax.random.normal(k1, (batch_size, num_classes), dtype=jnp.float32)
    labels = jax.random.randint(k2, (batch_size,), 0, num_classes, dtype=jnp.int32)
    weight_ce = jnp.array([1.0, 2.0, 0.5, 1.5], dtype=jnp.float32)  # weight_CE

    out = jax.block_until_ready(ce_loss(predicted, labels, weight_ce))
    ref = _ce_loss_ref(predicted, labels, weight_ce)
    assert jnp.allclose(out, ref, atol=1e-5, rtol=1e-5), (out, ref)

    # Second check: multi-block / dual-core path with a partial final tile.
    k3, k4 = jax.random.split(k1)
    B2, C2 = 100, 256
    pred2 = jax.random.normal(k3, (B2, C2), dtype=jnp.float32)
    lab2 = jax.random.randint(k4, (B2,), 0, C2, dtype=jnp.int32)
    w2 = jax.random.uniform(k3, (C2,), dtype=jnp.float32) + 0.5
    out2 = jax.block_until_ready(ce_loss(pred2, lab2, w2, tile_b=32))
    ref2 = _ce_loss_ref(pred2, lab2, w2)
    assert jnp.allclose(out2, ref2, atol=1e-4, rtol=1e-4), (out2, ref2)

    print("KERNEL_OK")
</pallas_src>

<mosaic_0001>
module attributes {stable_mosaic.version = 11 : i64} {
  func.func @_ce_loss_kernel(%arg0: i32, %arg1: i32, %arg2: memref<8x4xf32, #tpu.memory_space<vmem>>, %arg3: memref<8x1xi32, #tpu.memory_space<vmem>>, %arg4: memref<8x1xf32, #tpu.memory_space<vmem>>, %arg5: memref<1x8x1xf32, #tpu.memory_space<vmem>>, %arg6: memref<1x8x1xf32, #tpu.memory_space<vmem>>) attributes {dimension_semantics = [#tpu.dimension_semantics<parallel>, #tpu.dimension_semantics<arbitrary>], iteration_bounds = array<i64: 1, 1>, scalar_prefetch = 0 : i64, scratch_operands = 0 : i64, tpu.core_type = #tpu.core_type<tc>, window_params = [{transform_indices = @transform_0, window_bounds = array<i64: 8, 4>}, {transform_indices = @transform_1, window_bounds = array<i64: 8, 1>}, {transform_indices = @transform_2, window_bounds = array<i64: 8, 1>}, {transform_indices = @transform_3, window_bounds = array<i64: 1, 8, 1>}, {transform_indices = @transform_4, window_bounds = array<i64: 1, 8, 1>}]} {
    %c0_i32 = arith.constant 0 : i32
    %0 = arith.cmpi eq, %arg1, %c0_i32 : i32
    %1 = arith.extui %0 : i1 to i32
    %c0_i32_0 = arith.constant 0 : i32
    %2 = arith.cmpi ne, %1, %c0_i32_0 : i32
    scf.if %2 {
      %cst_24 = arith.constant 0.000000e+00 : f32
      %48 = vector.broadcast %cst_24 : f32 to vector<1x8x1xf32>
      %c0_25 = arith.constant 0 : index
      %c0_26 = arith.constant 0 : index
      %c0_27 = arith.constant 0 : index
      %49 = vector.load %arg5[%c0_25, %c0_26, %c0_27] : memref<1x8x1xf32, #tpu.memory_space<vmem>>, vector<1x8x1xf32>
      tpu.vector_store %arg5[%c0_25, %c0_26, %c0_27], %48 {strides = array<i32>} : memref<1x8x1xf32, #tpu.memory_space<vmem>>, vector<1x8x1xf32>,
      %cst_28 = arith.constant 0.000000e+00 : f32
      %50 = vector.broadcast %cst_28 : f32 to vector<1x8x1xf32>
      %c0_29 = arith.constant 0 : index
      %c0_30 = arith.constant 0 : index
      %c0_31 = arith.constant 0 : index
      %51 = vector.load %arg6[%c0_29, %c0_30, %c0_31] : memref<1x8x1xf32, #tpu.memory_space<vmem>>, vector<1x8x1xf32>
      tpu.vector_store %arg6[%c0_29, %c0_30, %c0_31], %50 {strides = array<i32>} : memref<1x8x1xf32, #tpu.memory_space<vmem>>, vector<1x8x1xf32>,
    } else {
    }
    %c0 = arith.constant 0 : index
    %c0_1 = arith.constant 0 : index
    %3 = vector.load %arg2[%c0, %c0_1] : memref<8x4xf32, #tpu.memory_space<vmem>>, vector<8x4xf32>
    %c0_2 = arith.constant 0 : index
    %c0_3 = arith.constant 0 : index
    %4 = vector.load %arg3[%c0_2, %c0_3] : memref<8x1xi32, #tpu.memory_space<vmem>>, vector<8x1xi32>
    %c0_4 = arith.constant 0 : index
    %c0_5 = arith.constant 0 : index
    %5 = vector.load %arg4[%c0_4, %c0_5] : memref<8x1xf32, #tpu.memory_space<vmem>>, vector<8x1xf32>
    %6 = tpu.iota {dimensions = array<i32: 0>} : vector<8x1xi32>
    %c1_i32 = arith.constant 1 : i32
    %7 = arith.muli %arg0, %c1_i32 : i32
    %8 = arith.addi %7, %arg1 : i32
    %c8_i32 = arith.constant 8 : i32
    %9 = arith.muli %8, %c8_i32 : i32
    %10 = vector.broadcast %9 : i32 to vector<8x1xi32>
    %11 = arith.addi %10, %6 : vector<8x1xi32>
    %c8_i32_6 = arith.constant 8 : i32
    %12 = vector.broadcast %c8_i32_6 : i32 to vector<8x1xi32>
    %13 = arith.cmpi slt, %11, %12 : vector<8x1xi32>
    %cst = arith.constant dense<0xFF800000> : vector<8xf32>
    %14 = vector.multi_reduction <maximumf>, %3, %cst [1] : vector<8x4xf32> to vector<8xf32>
    %15 = vector.shape_cast %14 : vector<8xf32> to vector<8x1xf32>
    %16 = vector.broadcast %15 : vector<8x1xf32> to vector<8x4xf32>
    %17 = arith.subf %3, %16 : vector<8x4xf32>
    %18 = math.exp %17 : vector<8x4xf32>
    %cst_7 = arith.constant dense<0.000000e+00> : vector<8xf32>
    %19 = vector.multi_reduction <add>, %18, %cst_7 [1] : vector<8x4xf32> to vector<8xf32>
    %20 = vector.shape_cast %19 : vector<8xf32> to vector<8x1xf32>
    %21 = math.log %20 : vector<8x1xf32>
    %22 = arith.addf %15, %21 : vector<8x1xf32>
    %23 = tpu.iota {dimensions = array<i32: 1>} : vector<8x4xi32>
    %24 = vector.broadcast %4 : vector<8x1xi32> to vector<8x4xi32>
    %25 = arith.cmpi eq, %23, %24 : vector<8x4xi32>
    %cst_8 = arith.constant 0.000000e+00 : f32
    %26 = vector.broadcast %cst_8 : f32 to vector<8x4xf32>
    %27 = arith.select %25, %3, %26 : vector<8x4xi1>, vector<8x4xf32>
    %cst_9 = arith.constant dense<0.000000e+00> : vector<8xf32>
    %28 = vector.multi_reduction <add>, %27, %cst_9 [1] : vector<8x4xf32> to vector<8xf32>
    %29 = vector.shape_cast %28 : vector<8xf32> to vector<8x1xf32>
    %30 = arith.subf %22, %29 : vector<8x1xf32>
    %31 = arith.mulf %5, %30 : vector<8x1xf32>
    %c0_10 = arith.constant 0 : index
    %c0_11 = arith.constant 0 : index
    %c0_12 = arith.constant 0 : index
    %32 = vector.load %arg5[%c0_10, %c0_11, %c0_12] : memref<1x8x1xf32, #tpu.memory_space<vmem>>, vector<1x8x1xf32>
    %33 = vector.shape_cast %32 : vector<1x8x1xf32> to vector<8x1xf32>
    %cst_13 = arith.constant 0.000000e+00 : f32
    %34 = vector.broadcast %cst_13 : f32 to vector<8x1xf32>
    %35 = arith.select %13, %31, %34 : vector<8x1xi1>, vector<8x1xf32>
    %36 = arith.addf %33, %35 : vector<8x1xf32>
    %c0_14 = arith.constant 0 : index
    %c0_15 = arith.constant 0 : index
    %c0_16 = arith.constant 0 : index
    %37 = vector.load %arg5[%c0_14, %c0_15, %c0_16] : memref<1x8x1xf32, #tpu.memory_space<vmem>>, vector<1x8x1xf32>
    %38 = vector.shape_cast %37 : vector<1x8x1xf32> to vector<8x1xf32>
    %39 = vector.shape_cast %36 : vector<8x1xf32> to vector<1x8x1xf32>
    tpu.vector_store %arg5[%c0_14, %c0_15, %c0_16], %39 {strides = array<i32>} : memref<1x8x1xf32, #tpu.memory_space<vmem>>, vector<1x8x1xf32>,
    %c0_17 = arith.constant 0 : index
    %c0_18 = arith.constant 0 : index
    %c0_19 = arith.constant 0 : index
    %40 = vector.load %arg6[%c0_17, %c0_18, %c0_19] : memref<1x8x1xf32, #tpu.memory_space<vmem>>, vector<1x8x1xf32>
    %41 = vector.shape_cast %40 : vector<1x8x1xf32> to vector<8x1xf32>
    %cst_20 = arith.constant 0.000000e+00 : f32
    %42 = vector.broadcast %cst_20 : f32 to vector<8x1xf32>
    %43 = arith.select %13, %5, %42 : vector<8x1xi1>, vector<8x1xf32>
    %44 = arith.addf %41, %43 : vector<8x1xf32>
    %c0_21 = arith.constant 0 : index
    %c0_22 = arith.constant 0 : index
    %c0_23 = arith.constant 0 : index
    %45 = vector.load %arg6[%c0_21, %c0_22, %c0_23] : memref<1x8x1xf32, #tpu.memory_space<vmem>>, vector<1x8x1xf32>
    %46 = vector.shape_cast %45 : vector<1x8x1xf32> to vector<8x1xf32>
    %47 = vector.shape_cast %44 : vector<8x1xf32> to vector<1x8x1xf32>
    tpu.vector_store %arg6[%c0_21, %c0_22, %c0_23], %47 {strides = array<i32>} : memref<1x8x1xf32, #tpu.memory_space<vmem>>, vector<1x8x1xf32>,
    return
  }
  func.func @transform_0(%arg0: i32, %arg1: i32) -> (i32, i32) {
    %c1_i32 = arith.constant 1 : i32
    %0 = arith.muli %arg0, %c1_i32 : i32
    %1 = arith.addi %0, %arg1 : i32
    %c0_i32 = arith.constant 0 : i32
    %2 = arith.minsi %1, %c0_i32 : i32
    %c0_i32_0 = arith.constant 0 : i32
    %c0_i32_1 = arith.constant 0 : i32
    return %2, %c0_i32_0 : i32, i32
  }
  func.func @transform_1(%arg0: i32, %arg1: i32) -> (i32, i32) {
    %c1_i32 = arith.constant 1 : i32
    %0 = arith.muli %arg0, %c1_i32 : i32
    %1 = arith.addi %0, %arg1 : i32
    %c0_i32 = arith.constant 0 : i32
    %2 = arith.minsi %1, %c0_i32 : i32
    %c0_i32_0 = arith.constant 0 : i32
    %c0_i32_1 = arith.constant 0 : i32
    return %2, %c0_i32_0 : i32, i32
  }
  func.func @transform_2(%arg0: i32, %arg1: i32) -> (i32, i32) {
    %c1_i32 = arith.constant 1 : i32
    %0 = arith.muli %arg0, %c1_i32 : i32
    %1 = arith.addi %0, %arg1 : i32
    %c0_i32 = arith.constant 0 : i32
    %2 = arith.minsi %1, %c0_i32 : i32
    %c0_i32_0 = arith.constant 0 : i32
    %c0_i32_1 = arith.constant 0 : i32
    return %2, %c0_i32_0 : i32, i32
  }
  func.func @transform_3(%arg0: i32, %arg1: i32) -> (i32, i32, i32) {
    %c0_i32 = arith.constant 0 : i32
    %c0_i32_0 = arith.constant 0 : i32
    %c0_i32_1 = arith.constant 0 : i32
    return %arg0, %c0_i32, %c0_i32_0 : i32, i32, i32
  }
  func.func @transform_4(%arg0: i32, %arg1: i32) -> (i32, i32, i32) {
    %c0_i32 = arith.constant 0 : i32
    %c0_i32_0 = arith.constant 0 : i32
    %c0_i32_1 = arith.constant 0 : i32
    return %arg0, %c0_i32, %c0_i32_0 : i32, i32, i32
  }
}

</mosaic_0001>

<bundles_post_ra>
// kernel: tpu_custom_call.1
= control target key start
LH: loop header
LB: loop body
LE: loop exit
PB: predicated region body
PF: predicated region fallthrough
CT: control target
= control target key end

     0   :  { %vm114_vm0 = vcmask 31744   ;;  %v181_v1 = vmov 0   ;;  %v127_v7 = vlaneseq  ;;  %vm101_vm2 = vcmask 7168   ;;  %s242_s0 = inlined_call_operand.vmem [shape: f32[8,4], index: 0, kind: input, shape index: {}]   ;;  %s243_s1 = inlined_call_operand.vmem [shape: s32[8,1], index: 1, kind: input, shape index: {}]   ;;  %s244_s3 = inlined_call_operand.vmem [shape: f32[1,8,1], index: 3, kind: output, shape index: {0}]   ;;  %s245_s4 = inlined_call_operand.vmem [shape: f32[1,8,1], index: 4, kind: output, shape index: {1}]   ;;  %s246_s2 = inlined_call_operand.vmem [shape: f32[8,1], index: 2, kind: input, shape index: {}]  }
   0x1   :  { %v104_v0 = vld [vmem:[%s242_s0] sm:$0xff]  ;;  %176 = vset.pattern.permute.xlu0 %v181_v1  ;;  %v182_v14 = vmov 0.0  }
   0x2   :  { %v115_v2 = vsel %vm114_vm0, %v104_v0, -inf  ;;  %v105_v3 = vld [vmem:[%s243_s1] sm:$0xff]  ;;  %v128_v8 = vand.u32 127, %v127_v7  ;;  %102 = vst.msk [vmem:[%s244_s3] sm:$0xff] %vm101_vm2, %v182_v14  ;;  %103 = vst.msk [vmem:[%s245_s4] sm:$0xff] %vm101_vm2, %v182_v14 }
   0x3   :  { %116 = vmax.xlane.f32.xlu0 %v115_v2  ;;  %v106_v15 = vld [vmem:[%s246_s2] sm:$0xff] }
   0x9   :  { %v144_v16 = vld [vmem:[%s245_s4] sm:$0xff] }
   0xa   :  { %v146_v17 = vadd.f32 %v144_v16, %v106_v15  ;;  %v139_v24 = vld [vmem:[%s244_s3] sm:$0xff] }
   0xc   :  { %147 = vst.msk [vmem:[%s245_s4] sm:$0xff] %vm101_vm2, %v146_v17 }
  0x19   :  { %130 = vperm.xlu0 %176, %v105_v3  }
  0x90   :  { %v117_v4 = vpop.xlane.xlu0 %116 }
  0x91   :  { %v118_v5 = vsub.f32 %v104_v0, %v117_v4 }
  0x93   :  { %v119_v6 = vmul.f32 1.442695, %v118_v5 }
  0x95   :  { %177 = vpow2.f32 %v119_v6 }
  0x98   :  { %v131_v9 = vpop.permute.xlu0 %130 }
  0x99   :  { %vm132_vm1 = vcmp.eq.s32.totalorder %v128_v8, %v131_v9 }
  0x9a   :  { %v133_v11 = vsel %vm132_vm1, %v104_v0, 0.0 }
  0x9b   :  { %v134_v13 = vsel %vm114_vm0, %v133_v11, 0.0 }
  0x9f   :  { %v178_v10 = vpop.eup %177 }
  0xa0   :  { %v121_v12 = vsel %vm114_vm0, %v178_v10, 0.0 }
  0xa1   :  { %122 = vadd.xlane.f32.xlu1 %v121_v12 }
  0xa5   :  { %135 = vadd.xlane.f32.xlu1 %v134_v13 }
 0x12e   :  { %v123_v18 = vpop.xlane.xlu1 %122 }
 0x12f   :  { %179 = vlog2.f32 %v123_v18 }
 0x132   :  { %v136_v21 = vpop.xlane.xlu1 %135 }
 0x139   :  { %v180_v19 = vpop.eup %179 }
 0x13a   :  { %v125_v20 = vmul.f32 0.6931472, %v180_v19 }
 0x13c   :  { %v126_v22 = vadd.f32 %v125_v20, %v117_v4 }
 0x13e   :  { %v137_v23 = vsub.f32 %v126_v22, %v136_v21 }
 0x140   :  { %v138_v25 = vmul.f32 %v137_v23, %v106_v15 }
 0x142   :  { %v141_v26 = vadd.f32 %v139_v24, %v138_v25 }
 0x144   :  { %143 = vst.msk [vmem:[%s244_s3] sm:$0xff] %vm101_vm2, %v141_v26 }

</bundles_post_ra>
